<compile_context>
chip_gen: v7x
topology: tpu7x:2x2x1
jax: 0.10.0
libtpu: 0.0.40
codegen_flags: <defaults>
</compile_context>

<pallas_src>
import jax
import jax.numpy as jnp
from jax.experimental import pallas as pl
from jax.experimental.pallas import tpu as pltpu


# ----------------------------- Pallas kernels ------------------------------

def _fused_caption_forward_kernel(px_ref, stem_ref, proj_w_ref, proj_b_ref,
                                  ids_ref, embed_ref, lm_w_ref,
                                  img_feat_ref, logits_ref):
    # px:       [B, C*HW]          f32
    # stem:     [C*HW, D_img]      bf16  (GAP 1/HW scale folded in at init)
    # proj_w:   [D_img, Timg*Dp]   bf16  (per-token width zero-padded to Dp)
    # proj_b:   [1, Timg*Dp]       f32
    # ids:      [B*S, 1]           int32
    # embed:    [V, Dp]            bf16  (V = vocab + 1 image token, Dp = 128)
    # lm_w:     [Dp, V]            bf16  (tied lm_head, pre-transposed at init)
    # img_feat: [B, Timg*Dp]       f32   (output, lane-dense)
    # logits:   [B*S + B*Timg, V]  f32   (output; text rows first, then image
    #                                     soft-token rows ordered t-major)
    B = px_ref.shape[0]
    V, Dp = embed_ref.shape
    timg_dp = proj_w_ref.shape[1]
    t_img = timg_dp // Dp
    BS = ids_ref.shape[0]

    # --- image encoder pooler stand-in: GAP folded into one MXU matmul ------
    pooler = jnp.dot(px_ref[...].astype(jnp.bfloat16), stem_ref[...],
                     preferred_element_type=jnp.float32)             # [B, D_img]

    # --- proj_image_features: nn.Linear(d_image_encoder, Timg*d_text) -------
    visual = (jnp.dot(pooler.astype(jnp.bfloat16), proj_w_ref[...],
                      preferred_element_type=jnp.float32)
              + proj_b_ref[...])                                      # [B, Timg*Dp]
    img_feat_ref[...] = visual

    # --- token embedding gather as a one-hot matmul (rides the MXU) ---------
    # TODO(synk): at real OPT vocab (~50k) replace with a scalar-prefetched /
    # SMEM-ids index gather; the [B*S, V] one-hot only works for tiny V.
    iota_v = jax.lax.broadcasted_iota(jnp.int32, (BS, V), 1)
    one_hot = (ids_ref[...] == iota_v).astype(jnp.bfloat16)           # [B*S, V]
    tok_emb = jnp.dot(one_hot, embed_ref[...],
                      preferred_element_type=jnp.float32)             # [B*S, Dp]

    # --- tied lm_head; hidden rows stay in vregs (no VMEM scratch) ----------
    # Text rows first: one full-tile, lane-dense store.
    logits_ref[0:BS, :] = jnp.dot(tok_emb.astype(jnp.bfloat16), lm_w_ref[...],
                                  preferred_element_type=jnp.float32)
    # Image soft-token rows: per image-token lane-aligned (Dp=128) slice of
    # visual, tiny [B, Dp] @ [Dp, V] dot, contiguous slice store (t-major).
    for t in range(t_img):
        h_t = visual[:, t * Dp:(t + 1) * Dp].astype(jnp.bfloat16)     # [B, Dp]
        logits_ref[BS + t * B:BS + (t + 1) * B, :] = jnp.dot(
            h_t, lm_w_ref[...], preferred_element_type=jnp.float32)


def _text_forward_kernel(ids_ref, embed_ref, lm_w_ref, logits_ref):
    # Text-only path (no pixel_values): one-hot embed + tied lm_head.
    BS = ids_ref.shape[0]
    V, Dp = embed_ref.shape
    iota_v = jax.lax.broadcasted_iota(jnp.int32, (BS, V), 1)
    one_hot = (ids_ref[...] == iota_v).astype(jnp.bfloat16)
    tok_emb = jnp.dot(one_hot, embed_ref[...],
                      preferred_element_type=jnp.float32)
    logits_ref[...] = jnp.dot(tok_emb.astype(jnp.bfloat16), lm_w_ref[...],
                              preferred_element_type=jnp.float32)


# ----------------------------- pallas_call wrappers -------------------------

def fused_caption_forward(px2d, stem_w, proj_w, proj_b, ids_col, embed, lm_w,
                          *, num_image_tokens):
    B, chw = px2d.shape
    V, Dp = embed.shape
    BS = ids_col.shape[0]
    timg_dp = proj_w.shape[1]
    n_rows = BS + B * num_image_tokens
    return pl.pallas_call(
        _fused_caption_forward_kernel,
        out_shape=(jax.ShapeDtypeStruct((B, timg_dp), jnp.float32),
                   jax.ShapeDtypeStruct((n_rows, V), jnp.float32)),
        grid=(1,),
        in_specs=[pl.BlockSpec((B, chw), lambda i: (0, 0)),
                  pl.BlockSpec(stem_w.shape, lambda i: (0, 0)),
                  pl.BlockSpec((stem_w.shape[1], timg_dp), lambda i: (0, 0)),
                  pl.BlockSpec((1, timg_dp), lambda i: (0, 0)),
                  pl.BlockSpec((BS, 1), lambda i: (0, 0)),
                  pl.BlockSpec((V, Dp), lambda i: (0, 0)),
                  pl.BlockSpec((Dp, V), lambda i: (0, 0))],
        out_specs=(pl.BlockSpec((B, timg_dp), lambda i: (0, 0)),
                   pl.BlockSpec((n_rows, V), lambda i: (0, 0))),
        compiler_params=pltpu.CompilerParams(
            dimension_semantics=("arbitrary",)),
    )(px2d, stem_w, proj_w, proj_b, ids_col, embed, lm_w)


def text_forward(ids_col, embed, lm_w):
    BS = ids_col.shape[0]
    V, Dp = embed.shape
    return pl.pallas_call(
        _text_forward_kernel,
        out_shape=jax.ShapeDtypeStruct((BS, V), jnp.float32),
        grid=(1,),
        in_specs=[pl.BlockSpec((BS, 1), lambda i: (0, 0)),
                  pl.BlockSpec((V, Dp), lambda i: (0, 0)),
                  pl.BlockSpec((Dp, V), lambda i: (0, 0))],
        out_specs=pl.BlockSpec((BS, V), lambda i: (0, 0)),
        compiler_params=pltpu.CompilerParams(
            dimension_semantics=("arbitrary",)),
    )(ids_col, embed, lm_w)


# ----------------------------- Model ---------------------------------------

class OPTCaptioningModelPallas:
    """Synthetic-weight JAX/Pallas version of OPTCaptioningModel.forward."""

    def __init__(self, key, *, in_channels=4, d_image_encoder=32,
                 d_text_encoder=32, num_image_tokens=2, vocab_size=127,
                 image_hw=(16, 16)):
        self.d_image_encoder = d_image_encoder
        self.d_text_encoder = d_text_encoder
        self.num_image_tokens = num_image_tokens
        # add_image_token(): resize_token_embeddings(num_embeddings + 1)
        self.num_embeddings = vocab_size + 1
        self._hw = image_hw[0] * image_hw[1]
        # lane-dense padded hidden width (logical d_text columns, rest zero)
        self.d_pad = ((d_text_encoder + 127) // 128) * 128

        k = jax.random.split(key, 4)
        scale = 0.02
        hw = float(self._hw)

        # stand-in image-encoder stem (1x1 conv).  GAP is folded in: the
        # per-channel row is repeated HW times and scaled by 1/HW, so the
        # kernel does a single [B, C*HW] @ [C*HW, D_img] MXU matmul.
        stem_f32 = scale * jax.random.normal(
            k[0], (in_channels, d_image_encoder), jnp.float32)
        self.stem_w = (jnp.repeat(stem_f32, self._hw, axis=0) / hw
                       ).astype(jnp.bfloat16)                 # [C*HW, D_img]

        # proj_image_features = nn.Linear(d_image_encoder, Timg*d_text),
        # per-token width zero-padded to d_pad lanes.
        proj_w3 = scale * jax.random.normal(
            k[1], (d_image_encoder, num_image_tokens, d_text_encoder),
            jnp.float32)
        proj_w3 = jnp.pad(proj_w3,
                          ((0, 0), (0, 0), (0, self.d_pad - d_text_encoder)))
        self.proj_w = proj_w3.reshape(
            d_image_encoder, num_image_tokens * self.d_pad).astype(jnp.bfloat16)

        proj_b2 = scale * jax.random.normal(
            k[2], (num_image_tokens, d_text_encoder), jnp.float32)
        proj_b2 = jnp.pad(proj_b2,
                          ((0, 0), (0, self.d_pad - d_text_encoder)))
        self.proj_b = proj_b2.reshape(1, num_image_tokens * self.d_pad)  # f32

        # text-encoder token embedding table (resized by +1 image token),
        # zero-padded to d_pad columns; tied lm_head pre-transposed ONCE.
        embed_f32 = scale * jax.random.normal(
            k[3], (self.num_embeddings, d_text_encoder), jnp.float32)
        embed_pad = jnp.pad(embed_f32,
                            ((0, 0), (0, self.d_pad - d_text_encoder)))
        self.embed = embed_pad.astype(jnp.bfloat16)            # [V, Dp]
        self.lm_head_w = embed_pad.T.astype(jnp.bfloat16)      # [Dp, V]

    def forward(self, input_ids, pixel_values=None):
        out = {}
        B, S = input_ids.shape
        V = self.num_embeddings
        D = self.d_text_encoder
        Dp = self.d_pad
        t_img = self.num_image_tokens
        ids_col = input_ids.reshape(B * S, 1).astype(jnp.int32)

        if pixel_values is None:
            logits2d = text_forward(ids_col, self.embed, self.lm_head_w)
            out['logits'] = logits2d.reshape(B, S, V)
            return out

        # pixel_values: NCHW [B, C, H, W] (PyTorch convention) -> [B, C*HW]
        Bp, C, H, W = pixel_values.shape
        assert Bp == B and H * W == self._hw
        px2d = pixel_values.reshape(B, C * H * W).astype(jnp.float32)

        img_feat_pad, logits2d = fused_caption_forward(
            px2d, self.stem_w, self.proj_w, self.proj_b, ids_col,
            self.embed, self.lm_head_w, num_image_tokens=t_img)

        # image_features: drop the zero lane padding -> [B, Timg*d_text]
        out['image_features'] = img_feat_pad.reshape(B, t_img, Dp)[:, :, :D] \
                                            .reshape(B, t_img * D)

        # Kernel emits rows [text tokens (B*S, b-major); image tokens
        # (t-major, then batch)]; cheap XLA glue reshuffles into [B, Timg+S, V]
        # with the image soft tokens prepended (module semantics).
        txt_logits = logits2d[:B * S].reshape(B, S, V)
        img_logits = logits2d[B * S:].reshape(t_img, B, V).transpose(1, 0, 2)
        out['logits'] = jnp.concatenate([img_logits, txt_logits], axis=1)
        return out


# ----------------------------- Driver ---------------------------------------

if __name__ == "__main__":
    key = jax.random.PRNGKey(0)
    k_model, k_px, k_ids = jax.random.split(key, 3)

    B, C, H, W = 2, 4, 16, 16
    S = 8
    vocab = 127

    model = OPTCaptioningModelPallas(k_model, in_channels=C, d_image_encoder=32,
                                     d_text_encoder=32, num_image_tokens=2,
                                     vocab_size=vocab, image_hw=(H, W))

    pixel_values = jax.random.normal(k_px, (B, C, H, W), jnp.float32)   # NCHW
    input_ids = jax.random.randint(k_ids, (B, S), 0, vocab, jnp.int32)

    out = model.forward(input_ids, pixel_values=pixel_values)
    jax.block_until_ready(out['logits'])
    jax.block_until_ready(out['image_features'])

    assert out['image_features'].shape == (B, 2 * 32)
    assert out['logits'].shape == (B, 2 + S, vocab + 1)
    assert bool(jnp.all(jnp.isfinite(out['logits'])))
    assert bool(jnp.all(jnp.isfinite(out['image_features'])))
    print("KERNEL_OK")
</pallas_src>

<mosaic_0001>
module attributes {stable_mosaic.version = 11 : i64} {
  func.func @_fused_caption_forward_kernel(%arg0: i32, %arg1: memref<2x1024xf32, #tpu.memory_space<vmem>>, %arg2: memref<1024x32xbf16, #tpu.memory_space<vmem>>, %arg3: memref<32x256xbf16, #tpu.memory_space<vmem>>, %arg4: memref<1x256xf32, #tpu.memory_space<vmem>>, %arg5: memref<16x1xi32, #tpu.memory_space<vmem>>, %arg6: memref<128x128xbf16, #tpu.memory_space<vmem>>, %arg7: memref<128x128xbf16, #tpu.memory_space<vmem>>, %arg8: memref<2x256xf32, #tpu.memory_space<vmem>>, %arg9: memref<20x128xf32, #tpu.memory_space<vmem>>) attributes {dimension_semantics = [#tpu.dimension_semantics<arbitrary>], iteration_bounds = array<i64: 1>, scalar_prefetch = 0 : i64, scratch_operands = 0 : i64, tpu.core_type = #tpu.core_type<tc>, window_params = [{pipeline_mode = #tpu.pipeline_mode<synchronous>, transform_indices = @transform_0, window_bounds = array<i64: 2, 1024>}, {pipeline_mode = #tpu.pipeline_mode<synchronous>, transform_indices = @transform_1, window_bounds = array<i64: 1024, 32>}, {pipeline_mode = #tpu.pipeline_mode<synchronous>, transform_indices = @transform_2, window_bounds = array<i64: 32, 256>}, {pipeline_mode = #tpu.pipeline_mode<synchronous>, transform_indices = @transform_3, window_bounds = array<i64: 1, 256>}, {pipeline_mode = #tpu.pipeline_mode<synchronous>, transform_indices = @transform_4, window_bounds = array<i64: 16, 1>}, {pipeline_mode = #tpu.pipeline_mode<synchronous>, transform_indices = @transform_5, window_bounds = array<i64: 128, 128>}, {pipeline_mode = #tpu.pipeline_mode<synchronous>, transform_indices = @transform_6, window_bounds = array<i64: 128, 128>}, {pipeline_mode = #tpu.pipeline_mode<synchronous>, transform_indices = @transform_7, window_bounds = array<i64: 2, 256>}, {pipeline_mode = #tpu.pipeline_mode<synchronous>, transform_indices = @transform_8, window_bounds = array<i64: 20, 128>}]} {
    %c0 = arith.constant 0 : index
    %c0_0 = arith.constant 0 : index
    %0 = vector.load %arg1[%c0, %c0_0] : memref<2x1024xf32, #tpu.memory_space<vmem>>, vector<2x1024xf32>
    %1 = arith.truncf %0 : vector<2x1024xf32> to vector<2x1024xbf16>
    %c0_1 = arith.constant 0 : index
    %c0_2 = arith.constant 0 : index
    %2 = vector.load %arg2[%c0_1, %c0_2] : memref<1024x32xbf16, #tpu.memory_space<vmem>>, vector<1024x32xbf16>
    %cst = arith.constant dense<0.000000e+00> : vector<2x32xf32>
    %3 = tpu.matmul %1, %2, %cst {dimension_numbers = #tpu.dot_dimension_numbers<[1], [0], [0], [1], [0, 0, 1, 1], [], []>} : vector<2x1024xbf16>, vector<1024x32xbf16>, vector<2x32xf32> -> vector<2x32xf32>
    %4 = arith.truncf %3 : vector<2x32xf32> to vector<2x32xbf16>
    %c0_3 = arith.constant 0 : index
    %c0_4 = arith.constant 0 : index
    %5 = vector.load %arg3[%c0_3, %c0_4] : memref<32x256xbf16, #tpu.memory_space<vmem>>, vector<32x256xbf16>
    %cst_5 = arith.constant dense<0.000000e+00> : vector<2x256xf32>
    %6 = tpu.matmul %4, %5, %cst_5 {dimension_numbers = #tpu.dot_dimension_numbers<[1], [0], [0], [1], [0, 0, 1, 1], [], []>} : vector<2x32xbf16>, vector<32x256xbf16>, vector<2x256xf32> -> vector<2x256xf32>
    %c0_6 = arith.constant 0 : index
    %c0_7 = arith.constant 0 : index
    %7 = vector.load %arg4[%c0_6, %c0_7] : memref<1x256xf32, #tpu.memory_space<vmem>>, vector<1x256xf32>
    %8 = vector.broadcast %7 : vector<1x256xf32> to vector<2x256xf32>
    %9 = arith.addf %6, %8 : vector<2x256xf32>
    %c0_8 = arith.constant 0 : index
    %c0_9 = arith.constant 0 : index
    %10 = vector.load %arg8[%c0_8, %c0_9] : memref<2x256xf32, #tpu.memory_space<vmem>>, vector<2x256xf32>
    tpu.vector_store %arg8[%c0_8, %c0_9], %9 {strides = array<i32>} : memref<2x256xf32, #tpu.memory_space<vmem>>, vector<2x256xf32>,
    %11 = tpu.iota {dimensions = array<i32: 1>} : vector<16x128xi32>
    %c0_10 = arith.constant 0 : index
    %c0_11 = arith.constant 0 : index
    %12 = vector.load %arg5[%c0_10, %c0_11] : memref<16x1xi32, #tpu.memory_space<vmem>>, vector<16x1xi32>
    %13 = vector.broadcast %12 : vector<16x1xi32> to vector<16x128xi32>
    %14 = arith.cmpi eq, %13, %11 : vector<16x128xi32>
    %15 = arith.extui %14 : vector<16x128xi1> to vector<16x128xi32>
    %16 = arith.sitofp %15 : vector<16x128xi32> to vector<16x128xf32>
    %17 = arith.truncf %16 : vector<16x128xf32> to vector<16x128xbf16>
    %c0_12 = arith.constant 0 : index
    %c0_13 = arith.constant 0 : index
    %18 = vector.load %arg6[%c0_12, %c0_13] : memref<128x128xbf16, #tpu.memory_space<vmem>>, vector<128x128xbf16>
    %cst_14 = arith.constant dense<0.000000e+00> : vector<16x128xf32>
    %19 = tpu.matmul %17, %18, %cst_14 {dimension_numbers = #tpu.dot_dimension_numbers<[1], [0], [0], [1], [0, 0, 1, 1], [], []>} : vector<16x128xbf16>, vector<128x128xbf16>, vector<16x128xf32> -> vector<16x128xf32>
    %20 = arith.truncf %19 : vector<16x128xf32> to vector<16x128xbf16>
    %c0_15 = arith.constant 0 : index
    %c0_16 = arith.constant 0 : index
    %21 = vector.load %arg7[%c0_15, %c0_16] : memref<128x128xbf16, #tpu.memory_space<vmem>>, vector<128x128xbf16>
    %cst_17 = arith.constant dense<0.000000e+00> : vector<16x128xf32>
    %22 = tpu.matmul %20, %21, %cst_17 {dimension_numbers = #tpu.dot_dimension_numbers<[1], [0], [0], [1], [0, 0, 1, 1], [], []>} : vector<16x128xbf16>, vector<128x128xbf16>, vector<16x128xf32> -> vector<16x128xf32>
    %c0_18 = arith.constant 0 : index
    %c0_19 = arith.constant 0 : index
    %23 = vector.load %arg9[%c0_18, %c0_19] : memref<20x128xf32, #tpu.memory_space<vmem>>, vector<16x128xf32>
    tpu.vector_store %arg9[%c0_18, %c0_19], %22 {strides = array<i32>} : memref<20x128xf32, #tpu.memory_space<vmem>>, vector<16x128xf32>,
    %24 = vector.extract_strided_slice %9 {offsets = [0, 0], sizes = [2, 128], strides = [1, 1]} : vector<2x256xf32> to vector<2x128xf32>
    %25 = arith.truncf %24 : vector<2x128xf32> to vector<2x128xbf16>
    %c0_20 = arith.constant 0 : index
    %c0_21 = arith.constant 0 : index
    %26 = vector.load %arg7[%c0_20, %c0_21] : memref<128x128xbf16, #tpu.memory_space<vmem>>, vector<128x128xbf16>
    %cst_22 = arith.constant dense<0.000000e+00> : vector<2x128xf32>
    %27 = tpu.matmul %25, %26, %cst_22 {dimension_numbers = #tpu.dot_dimension_numbers<[1], [0], [0], [1], [0, 0, 1, 1], [], []>} : vector<2x128xbf16>, vector<128x128xbf16>, vector<2x128xf32> -> vector<2x128xf32>
    %c16 = arith.constant 16 : index
    %c0_23 = arith.constant 0 : index
    %28 = vector.load %arg9[%c16, %c0_23] : memref<20x128xf32, #tpu.memory_space<vmem>>, vector<2x128xf32>
    tpu.vector_store %arg9[%c16, %c0_23], %27 {strides = array<i32>} : memref<20x128xf32, #tpu.memory_space<vmem>>, vector<2x128xf32>,
    %29 = vector.extract_strided_slice %9 {offsets = [0, 128], sizes = [2, 128], strides = [1, 1]} : vector<2x256xf32> to vector<2x128xf32>
    %30 = arith.truncf %29 : vector<2x128xf32> to vector<2x128xbf16>
    %c0_24 = arith.constant 0 : index
    %c0_25 = arith.constant 0 : index
    %31 = vector.load %arg7[%c0_24, %c0_25] : memref<128x128xbf16, #tpu.memory_space<vmem>>, vector<128x128xbf16>
    %cst_26 = arith.constant dense<0.000000e+00> : vector<2x128xf32>
    %32 = tpu.matmul %30, %31, %cst_26 {dimension_numbers = #tpu.dot_dimension_numbers<[1], [0], [0], [1], [0, 0, 1, 1], [], []>} : vector<2x128xbf16>, vector<128x128xbf16>, vector<2x128xf32> -> vector<2x128xf32>
    %c18 = arith.constant 18 : index
    %c0_27 = arith.constant 0 : index
    %33 = vector.load %arg9[%c18, %c0_27] : memref<20x128xf32, #tpu.memory_space<vmem>>, vector<2x128xf32>
    tpu.vector_store %arg9[%c18, %c0_27], %32 {strides = array<i32>} : memref<20x128xf32, #tpu.memory_space<vmem>>, vector<2x128xf32>,
    return
  }
  func.func @transform_0(%arg0: i32) -> (i32, i32) {
    %c0_i32 = arith.constant 0 : i32
    %c0_i32_0 = arith.constant 0 : i32
    %c0_i32_1 = arith.constant 0 : i32
    return %c0_i32, %c0_i32_0 : i32, i32
  }
  func.func @transform_1(%arg0: i32) -> (i32, i32) {
    %c0_i32 = arith.constant 0 : i32
    %c0_i32_0 = arith.constant 0 : i32
    %c0_i32_1 = arith.constant 0 : i32
    return %c0_i32, %c0_i32_0 : i32, i32
  }
  func.func @transform_2(%arg0: i32) -> (i32, i32) {
    %c0_i32 = arith.constant 0 : i32
    %c0_i32_0 = arith.constant 0 : i32
    %c0_i32_1 = arith.constant 0 : i32
    return %c0_i32, %c0_i32_0 : i32, i32
  }
  func.func @transform_3(%arg0: i32) -> (i32, i32) {
    %c0_i32 = arith.constant 0 : i32
    %c0_i32_0 = arith.constant 0 : i32
    %c0_i32_1 = arith.constant 0 : i32
    return %c0_i32, %c0_i32_0 : i32, i32
  }
  func.func @transform_4(%arg0: i32) -> (i32, i32) {
    %c0_i32 = arith.constant 0 : i32
    %c0_i32_0 = arith.constant 0 : i32
    %c0_i32_1 = arith.constant 0 : i32
    return %c0_i32, %c0_i32_0 : i32, i32
  }
  func.func @transform_5(%arg0: i32) -> (i32, i32) {
    %c0_i32 = arith.constant 0 : i32
    %c0_i32_0 = arith.constant 0 : i32
    %c0_i32_1 = arith.constant 0 : i32
    return %c0_i32, %c0_i32_0 : i32, i32
  }
  func.func @transform_6(%arg0: i32) -> (i32, i32) {
    %c0_i32 = arith.constant 0 : i32
    %c0_i32_0 = arith.constant 0 : i32
    %c0_i32_1 = arith.constant 0 : i32
    return %c0_i32, %c0_i32_0 : i32, i32
  }
  func.func @transform_7(%arg0: i32) -> (i32, i32) {
    %c0_i32 = arith.constant 0 : i32
    %c0_i32_0 = arith.constant 0 : i32
    %c0_i32_1 = arith.constant 0 : i32
    return %c0_i32, %c0_i32_0 : i32, i32
  }
  func.func @transform_8(%arg0: i32) -> (i32, i32) {
    %c0_i32 = arith.constant 0 : i32
    %c0_i32_0 = arith.constant 0 : i32
    %c0_i32_1 = arith.constant 0 : i32
    return %c0_i32, %c0_i32_0 : i32, i32
  }
}

</mosaic_0001>

<bundles_post_ra>
// kernel: tpu_custom_call.1
= control target key start
LH: loop header
LB: loop body
LE: loop exit
PB: predicated region body
PF: predicated region fallthrough
CT: control target
= control target key end

     0   :  { %14 = vsyncpa [#allocation3], 0  ;;  %v1795_v2 = vmov 0   ;;  %v39_v29 = vlaneseq  ;;  %v1796_v37 = vmov 1983009808   ;;  %s2243_s0 = inlined_call_operand.vmem [shape: f32[2,1024], index: 0, kind: input, shape index: {}]   ;;  %s2244_s1 = inlined_call_operand.vmem [shape: bf16[1024,32], index: 1, kind: input, shape index: {}]   ;;  %s2245_s2 = inlined_call_operand.vmem [shape: bf16[32,256], index: 2, kind: input, shape index: {}]   ;;  %s2246_s3 = inlined_call_operand.vmem [shape: f32[1,256], index: 3, kind: input, shape index: {}]   ;;  %s2247_s4 = inlined_call_operand.vmem [shape: s32[16,1], index: 4, kind: input, shape index: {}]   ;;  %s2248_s5 = inlined_call_operand.vmem [shape: bf16[128,128], index: 5, kind: input, shape index: {}]   ;;  %s2249_s6 = inlined_call_operand.vmem [shape: bf16[128,128], index: 6, kind: input, shape index: {}]   ;;  %s2250_s7 = inlined_call_operand.hbm [shape: f32[2,256], index: 7, kind: output, shape index: {0}]   ;;  %s2251_s8 = inlined_call_operand.hbm [shape: f32[20,128], index: 8, kind: output, shape index: {1}]  }
   0x1   :  { %v1643_v0 = vld [vmem:[%s2244_s1 + $0x40] sm:$0xff]   ;;  %1642 = vset.pattern.permute.xlu0 %v1795_v2  ;;  %v1647_v5 = vld [vmem:[%s2244_s1 + $0x48] sm:$0xff]   ;;  %v1651_v9 = vld [vmem:[%s2244_s1 + $0x50] sm:$0xff]   ;;  %v37_v38 = vunpack.c.l.s4 %v1796_v37 }
   0x2   :  { %v1644_v1 = vld [vmem:[%s2244_s1 + $0xc0] sm:$0xff]   ;;  %1429 = vmatprep.subr.bf16.mxu0 %v1643_v0  ;;  %v1648_v6 = vld [vmem:[%s2244_s1 + $0xc8] sm:$0xff]   ;;  %v1652_v10 = vld [vmem:[%s2244_s1 + $0xd0] sm:$0xff]   ;;  %v1947_v34 = vshrl.u32 %v39_v29, 7 }
   0x3   :  { %v1645_v3 = vld [vmem:[%s2244_s1] sm:$0xff]   ;;  %1451 = vmatprep.subr.bf16.mxu1 %v1644_v1  ;;  %v1649_v7 = vld [vmem:[%s2244_s1 + $0x8] sm:$0xff]   ;;  %v1653_v11 = vld [vmem:[%s2244_s1 + $0x10] sm:$0xff]   ;;  %v38_v40 = vunpack.c.0.s8 %v37_v38 }
   0x4   :  { %v1646_v4 = vld [vmem:[%s2244_s1 + $0x80] sm:$0xff]   ;;  %1430 = vmatpush3.bf16.msra.mxu0 %v1645_v3  ;;  %v1650_v8 = vld [vmem:[%s2244_s1 + $0x88] sm:$0xff]   ;;  %v1654_v12 = vld [vmem:[%s2244_s1 + $0x90] sm:$0xff]  }
   0x5   :  { %1452 = vmatpush3.bf16.msra.mxu1 %v1646_v4  ;;  %1431 = vmatprep.subr.bf16.mxu0 %v1647_v5  ;;  %v1655_v13 = vld [vmem:[%s2244_s1 + $0x58] sm:$0xff]   ;;  %v1659_v17 = vld [vmem:[%s2244_s1 + $0x60] sm:$0xff]   ;;  %v1663_v21 = vld [vmem:[%s2244_s1 + $0x68] sm:$0xff]   ;;  %v1959_v42 = vsub.s32 %v38_v40, %v1947_v34 }
   0x6   :  { %1453 = vmatprep.subr.bf16.mxu1 %v1648_v6  ;;  %v1656_v14 = vld [vmem:[%s2244_s1 + $0xd8] sm:$0xff]   ;;  %v1660_v18 = vld [vmem:[%s2244_s1 + $0xe0] sm:$0xff]   ;;  %v1664_v22 = vld [vmem:[%s2244_s1 + $0xe8] sm:$0xff]  }
   0x7   :  { %v1657_v15 = vld [vmem:[%s2244_s1 + $0x18] sm:$0xff]   ;;  %v1661_v19 = vld [vmem:[%s2244_s1 + $0x20] sm:$0xff]   ;;  %v1665_v23 = vld [vmem:[%s2244_s1 + $0x28] sm:$0xff]  }
   0x8   :  { %1432 = vmatpush3.bf16.msra.mxu0 %v1649_v7  ;;  %v1658_v16 = vld [vmem:[%s2244_s1 + $0x98] sm:$0xff]   ;;  %v1662_v20 = vld [vmem:[%s2244_s1 + $0xa0] sm:$0xff]   ;;  %v1666_v24 = vld [vmem:[%s2244_s1 + $0xa8] sm:$0xff]  }
   0x9   :  { %1454 = vmatpush3.bf16.msra.mxu1 %v1650_v8  ;;  %1433 = vmatprep.subr.bf16.mxu0 %v1651_v9  ;;  %v1667_v25 = vld [vmem:[%s2244_s1 + $0x70] sm:$0xff]   ;;  %v1671_v30 = vld [vmem:[%s2244_s1 + $0x78] sm:$0xff]   ;;  %v31_v35 = vld [vmem:[%s2243_s0] sm:$0xff] }
   0xa   :  { %1455 = vmatprep.subr.bf16.mxu1 %v1652_v10  ;;  %v1668_v26 = vld [vmem:[%s2244_s1 + $0xf0] sm:$0xff]   ;;  %v1672_v31 = vld [vmem:[%s2244_s1 + $0xf8] sm:$0xff]   ;;  %v1676_v36 = vld [vmem:[%s2244_s1 + $0x140] sm:$0xff]   ;;  %v35_v41 = vcombine.high %v31_v35, %v31_v35  ;;  %v42_v43 = vrot.slane %v31_v35, %v1959_v42 }
   0xb   :  { %v1669_v27 = vld [vmem:[%s2244_s1 + $0x30] sm:$0xff]   ;;  %v1673_v32 = vld [vmem:[%s2244_s1 + $0x38] sm:$0xff]   ;;  %v1677_v39 = vld [vmem:[%s2244_s1 + $0x1c0] sm:$0xff]  }
   0xc   :  { %1434 = vmatpush3.bf16.msra.mxu0 %v1653_v11  ;;  %v1670_v28 = vld [vmem:[%s2244_s1 + $0xb0] sm:$0xff]   ;;  %v1674_v33 = vld [vmem:[%s2244_s1 + $0xb8] sm:$0xff]   ;;  %v49_v44 = vrot.slane %v35_v41, %v1959_v42  ;;  %v50_v45 = vcombine.high %v42_v43, %v42_v43  ;;  %v1678_v47 = vld [vmem:[%s2244_s1 + $0x100] sm:$0xff]   ;;  %v77_v48 = vpack.c.bf16 %v42_v43, %v42_v43 }
   0xd   :  { %1456 = vmatpush3.bf16.msra.mxu1 %v1654_v12  ;;  %1435 = vmatprep.subr.bf16.mxu0 %v1655_v13  ;;  %v1679_v50 = vld [vmem:[%s2244_s1 + $0x180] sm:$0xff]   ;;  %v1680_v53 = vld [vmem:[%s2244_s1 + $0x148] sm:$0xff]   ;;  %v1684_v57 = vld [vmem:[%s2244_s1 + $0x150] sm:$0xff]  }
   0xe   :  { %1457 = vmatprep.subr.bf16.mxu1 %v1656_v14  ;;  %v51_v46 = vcombine.high %v49_v44, %v49_v44  ;;  %v79_v49 = vpack.c.bf16 %v49_v44, %v49_v44  ;;  %v78_v51 = vpack.c.bf16 %v50_v45, %v50_v45  ;;  %v1681_v54 = vld [vmem:[%s2244_s1 + $0x1c8] sm:$0xff]   ;;  %v1685_v58 = vld [vmem:[%s2244_s1 + $0x1d0] sm:$0xff]   ;;  %v1688_v61 = vld [vmem:[%s2244_s1 + $0x158] sm:$0xff]  }
   0xf   :  { %v1682_v55 = vld [vmem:[%s2244_s1 + $0x108] sm:$0xff]   ;;  %v1686_v59 = vld [vmem:[%s2244_s1 + $0x110] sm:$0xff]   ;;  %v1689_v62 = vld [vmem:[%s2244_s1 + $0x1d8] sm:$0xff]  }
  0x10   :  { %1436 = vmatpush3.bf16.msra.mxu0 %v1657_v15  ;;  %v80_v52 = vpack.c.bf16 %v51_v46, %v51_v46  ;;  %629 = vmatprep.mubr.bf16.mxu0 %v78_v51  ;;  %v1683_v56 = vld [vmem:[%s2244_s1 + $0x188] sm:$0xff]   ;;  %v1687_v60 = vld [vmem:[%s2244_s1 + $0x190] sm:$0xff]   ;;  %v1690_v63 = vld [vmem:[%s2244_s1 + $0x118] sm:$0xff]  }
  0x11   :  { %1458 = vmatpush3.bf16.msra.mxu1 %v1658_v16  ;;  %1437 = vmatprep.subr.bf16.mxu0 %v1659_v17  ;;  %v1691_v0 = vld [vmem:[%s2244_s1 + $0x198] sm:$0xff]   ;;  %v1692_v1 = vld [vmem:[%s2244_s1 + $0x160] sm:$0xff]   ;;  %v1696_v6 = vld [vmem:[%s2244_s1 + $0x168] sm:$0xff]  }
  0x12   :  { %1459 = vmatprep.subr.bf16.mxu1 %v1660_v18  ;;  %669 = vmatprep.mubr.bf16.mxu1 %v80_v52  ;;  %v1693_v3 = vld [vmem:[%s2244_s1 + $0x1e0] sm:$0xff]   ;;  %v1697_v7 = vld [vmem:[%s2244_s1 + $0x1e8] sm:$0xff]   ;;  %v1700_v10 = vld [vmem:[%s2244_s1 + $0x170] sm:$0xff]  }
  0x13   :  { %v1694_v4 = vld [vmem:[%s2244_s1 + $0x120] sm:$0xff]   ;;  %v1698_v8 = vld [vmem:[%s2244_s1 + $0x128] sm:$0xff]   ;;  %v1701_v11 = vld [vmem:[%s2244_s1 + $0x1f0] sm:$0xff]  }
  0x14   :  { %1438 = vmatpush3.bf16.msra.mxu0 %v1661_v19  ;;  %v1695_v5 = vld [vmem:[%s2244_s1 + $0x1a0] sm:$0xff]   ;;  %v1699_v9 = vld [vmem:[%s2244_s1 + $0x1a8] sm:$0xff]   ;;  %v1702_v14 = vld [vmem:[%s2244_s1 + $0x130] sm:$0xff]  }
  0x15   :  { %1460 = vmatpush3.bf16.msra.mxu1 %v1662_v20  ;;  %1439 = vmatprep.subr.bf16.mxu0 %v1663_v21  ;;  %v32_v12 = vld [vmem:[%s2243_s0 + $0x8] sm:$0xff]  ;;  %v853_v13 = vld [vmem:[%s2247_s4] sm:$0xff]  ;;  %v1703_v15 = vld [vmem:[%s2244_s1 + $0x1b0] sm:$0xff]  }
  0x16   :  { %1461 = vmatprep.subr.bf16.mxu1 %v1664_v22  ;;  %v59_v16 = vrot.slane %v32_v12, %v1959_v42  ;;  %v52_v17 = vcombine.high %v32_v12, %v32_v12  ;;  %856 = vperm.xlu0 %1642, %v853_v13   ;;  %v854_v18 = vld [vmem:[%s2247_s4 + $0x8] sm:$0xff]  ;;  %v1704_v19 = vld [vmem:[%s2244_s1 + $0x178] sm:$0xff]   ;;  %v1711_v35 = vld [vmem:[%s2248_s5 + $0x10] sm:$0xff]  }
  0x17   :  { %v1705_v22 = vld [vmem:[%s2244_s1 + $0x1f8] sm:$0xff]  }
  0x18   :  { %1440 = vmatpush3.bf16.msra.mxu0 %v1665_v23  ;;  %v67_v20 = vcombine.high %v59_v16, %v59_v16  ;;  %v66_v21 = vrot.slane %v52_v17, %v1959_v42 }
  0x19   :  { %1462 = vmatpush3.bf16.msra.mxu1 %v1666_v24  ;;  %1441 = vmatprep.subr.bf16.mxu0 %v1667_v25  ;;  %v1706_v25 = vld [vmem:[%s2244_s1 + $0x138] sm:$0xff]  }
  0x1a   :  { %1463 = vmatprep.subr.bf16.mxu1 %v1668_v26  ;;  %v82_v23 = vpack.c.bf16 %v67_v20, %v67_v20  ;;  %v68_v24 = vcombine.high %v66_v21, %v66_v21  ;;  %859 = vperm.xlu0 %1642, %v854_v18   ;;  %v1707_v26 = vld [vmem:[%s2244_s1 + $0x1b8] sm:$0xff]  }
  0x1c   :  { %1442 = vmatpush3.bf16.msra.mxu0 %v1669_v27  ;;  %v84_v27 = vpack.c.bf16 %v68_v24, %v68_v24 }
  0x1d   :  { %1464 = vmatpush3.bf16.msra.mxu1 %v1670_v28  ;;  %1443 = vmatprep.subr.bf16.mxu0 %v1671_v30  ;;  %v1709_v28 = vld [vmem:[%s2248_s5] sm:$0xff]   ;;  %v81_v30 = vpack.c.bf16 %v59_v16, %v59_v16 }
  0x1e   :  { %1465 = vmatprep.subr.bf16.mxu1 %v1672_v31  ;;  %v83_v31 = vpack.c.bf16 %v66_v21, %v66_v21 }
  0x20   :  { %1444 = vmatpush3.bf16.msra.mxu0 %v1673_v32  ;;  %v1797_v32 = vmov 0.0  }
  0x21   :  { %1466 = vmatpush3.bf16.msra.mxu1 %v1674_v33  ;;  %1473 = vmatprep.subr.bf16.mxu0 %v1676_v36  ;;  %v1710_v33 = vld [vmem:[%s2248_s5 + $0x8] sm:$0xff]   ;;  %v1712_v36 = vld [vmem:[%s2248_s5 + $0x18] sm:$0xff]  }
  0x22   :  { %1495 = vmatprep.subr.bf16.mxu1 %v1677_v39 }
  0x23   :  { %630 = vmatmul.mubr.bf16.vlgmr.msra.gmra.mrb[0].mxu0 %v77_v48 }
  0x24   :  { %670 = vmatmul.mubr.bf16.vlgmr.msra.gmra.mrb[0].mxu1 %v79_v49  ;;  %1474 = vmatpush3.bf16.msra.mxu0 %v1678_v47 }
  0x25   :  { %1496 = vmatpush3.bf16.msra.mxu1 %v1679_v50  ;;  %1475 = vmatprep.subr.bf16.mxu0 %v1680_v53 }
  0x26   :  { %1497 = vmatprep.subr.bf16.mxu1 %v1681_v54  ;;  %709 = vmatprep.mubr.bf16.mxu0 %v82_v23 }
  0x27   :  { %749 = vmatprep.mubr.bf16.mxu1 %v84_v27 }
  0x28   :  { %1476 = vmatpush3.bf16.msra.mxu0 %v1682_v55 }
  0x29   :  { %1498 = vmatpush3.bf16.msra.mxu1 %v1683_v56  ;;  %1477 = vmatprep.subr.bf16.mxu0 %v1684_v57 }
  0x2a   :  { %1499 = vmatprep.subr.bf16.mxu1 %v1685_v58 }
  0x2c   :  { %1478 = vmatpush3.bf16.msra.mxu0 %v1686_v59 }
  0x2d   :  { %1500 = vmatpush3.bf16.msra.mxu1 %v1687_v60  ;;  %1479 = vmatprep.subr.bf16.mxu0 %v1688_v61 }
  0x2e   :  { %1501 = vmatprep.subr.bf16.mxu1 %v1689_v62 }
  0x30   :  { %1480 = vmatpush3.bf16.msra.mxu0 %v1690_v63 }
  0x31   :  { %1502 = vmatpush3.bf16.msra.mxu1 %v1691_v0  ;;  %1481 = vmatprep.subr.bf16.mxu0 %v1692_v1 }
  0x32   :  { %1503 = vmatprep.subr.bf16.mxu1 %v1693_v3 }
  0x34   :  { %1482 = vmatpush3.bf16.msra.mxu0 %v1694_v4 }
  0x35   :  { %1504 = vmatpush3.bf16.msra.mxu1 %v1695_v5  ;;  %1483 = vmatprep.subr.bf16.mxu0 %v1696_v6 }
  0x36   :  { %1505 = vmatprep.subr.bf16.mxu1 %v1697_v7 }
  0x38   :  { %1484 = vmatpush3.bf16.msra.mxu0 %v1698_v8 }
  0x39   :  { %1506 = vmatpush3.bf16.msra.mxu1 %v1699_v9  ;;  %1485 = vmatprep.subr.bf16.mxu0 %v1700_v10 }
  0x3a   :  { %1507 = vmatprep.subr.bf16.mxu1 %v1701_v11 }
  0x3c   :  { %1486 = vmatpush3.bf16.msra.mxu0 %v1702_v14 }
  0x3d   :  { %1508 = vmatpush3.bf16.msra.mxu1 %v1703_v15  ;;  %1487 = vmatprep.subr.bf16.mxu0 %v1704_v19 }
  0x3e   :  { %1509 = vmatprep.subr.bf16.mxu1 %v1705_v22 }
  0x40   :  { %1488 = vmatpush3.bf16.msra.mxu0 %v1706_v25 }
  0x41   :  { %1510 = vmatpush3.bf16.msra.mxu1 %v1707_v26 }
  0x42   :  { %1553 = vmatprep.subr.bf16.mxu1 %v1797_v32 }
  0x43   :  { %710 = vmatmul.mubr.bf16.vlgmr.msra.gmra.mrb[4].mxu0 %v81_v30 }
  0x44   :  { %750 = vmatmul.mubr.bf16.vlgmr.msra.gmra.mrb[4].mxu1 %v83_v31  ;;  %830 = vmatprep.mubr.bf16.mxu0 %v1795_v2 }
  0x45   :  { %1554 = vmatpush3.bf16.msra.mxu1 %v1709_v28 }
  0x46   :  { %1555 = vmatprep.subr.bf16.mxu1 %v1797_v32 }
  0x49   :  { %1556 = vmatpush3.bf16.msra.mxu1 %v1710_v33 }
  0x4a   :  { %1557 = vmatprep.subr.bf16.mxu1 %v1797_v32 }
  0x4d   :  { %1558 = vmatpush3.bf16.msra.mxu1 %v1711_v35 }
  0x4e   :  { %1559 = vmatprep.subr.bf16.mxu1 %v1797_v32 }
  0x4f   :  { %15 = vsyncpa [#allocation5], 0  ;;  %v1713_v2 = vld [vmem:[%s2248_s5 + $0x20] sm:$0xff]   ;;  %v1714_v37 = vld [vmem:[%s2248_s5 + $0x28] sm:$0xff]   ;;  %vm1798_vm0 = vmmov 0   ;;  %v852_v44 = vand.u32 127, %v39_v29 }
  0x50   :  { %v1715_v38 = vld [vmem:[%s2248_s5 + $0x30] sm:$0xff]   ;;  %v1716_v39 = vld [vmem:[%s2248_s5 + $0x38] sm:$0xff]   ;;  %1569 = vmatprep.mubr.msk.bf16.mxu1 %vm1798_vm0, %v1797_v32  ;;  %v1719_v40 = vld [vmem:[%s2245_s2 + $0x4] ss:$8 sps:$4 sm:$0xff]   ;;  %v1799_v47 = vmov 1.0|1.0  }
  0x51   :  { %1560 = vmatpush3.bf16.msra.mxu1 %v1712_v36  ;;  %v1717_v41 = vld [vmem:[%s2245_s2] ss:$8 sps:$4 sm:$0xff]   ;;  %798 = vmatprep.subr.bf16.mxu0 %v1719_v40  ;;  %v1722_v42 = vld [vmem:[%s2245_s2 + $0x14] ss:$8 sps:$4 sm:$0xff]   ;;  %v1720_v43 = vld [vmem:[%s2245_s2 + $0x10] ss:$8 sps:$4 sm:$0xff]  }
  0x52   :  { %1561 = vmatprep.subr.bf16.mxu1 %v1797_v32  ;;  %799 = vmatpush1.bf16.msra.mxu0 %v1717_v41  ;;  %v1731_v58 = vld [vmem:[%s2249_s6] sm:$0xff]   ;;  %v1733_v61 = vld [vmem:[%s2249_s6 + $0x8] sm:$0xff]   ;;  %v1735_v8 = vld [vmem:[%s2249_s6 + $0x10] sm:$0xff]   ;;  %vm794_vm4 = vcmask 261120   ;;  %v770_v41 = vsub.s32 1, %v1947_v34 }
  0x53   :  { %800 = vmatprep.subr.bf16.mxu0 %v1722_v42  ;;  %v1723_v10 = vld [vmem:[%s2249_s6] sm:$0xff]   ;;  %v1737_v12 = vld [vmem:[%s2249_s6 + $0x18] sm:$0xff]   ;;  %v1724_v13 = vld [vmem:[%s2249_s6 + $0x8] sm:$0xff]  }
  0x54   :  { %v1739_v14 = vld [vmem:[%s2249_s6 + $0x20] sm:$0xff]   ;;  %v1725_v15 = vld [vmem:[%s2249_s6 + $0x10] sm:$0xff]   ;;  %v1741_v16 = vld [vmem:[%s2249_s6 + $0x28] sm:$0xff]  }
  0x55   :  { %1562 = vmatpush3.bf16.msra.mxu1 %v1713_v2  ;;  %v1726_v17 = vld [vmem:[%s2249_s6 + $0x18] sm:$0xff]   ;;  %v1743_v18 = vld [vmem:[%s2249_s6 + $0x30] sm:$0xff]   ;;  %v1727_v19 = vld [vmem:[%s2249_s6 + $0x20] sm:$0xff]  }
  0x56   :  { %1563 = vmatprep.subr.bf16.mxu1 %v1797_v32  ;;  %801 = vmatpush1.bf16.msra.mxu0 %v1720_v43  ;;  %v1728_v20 = vld [vmem:[%s2249_s6 + $0x28] sm:$0xff]   ;;  %v1729_v21 = vld [vmem:[%s2249_s6 + $0x30] sm:$0xff]   ;;  %v1730_v22 = vld [vmem:[%s2249_s6 + $0x38] sm:$0xff]  }
  0x57   :  { %1573 = vmatprep.subr.bf16.mxu0 %v1797_v32  ;;  %v1745_v23 = vld [vmem:[%s2249_s6 + $0x38] sm:$0xff]   ;;  %v1732_v27 = vld [vmem:[%s2249_s6] sm:$0xff]   ;;  %v1734_v31 = vld [vmem:[%s2249_s6 + $0x8] sm:$0xff]  }
  0x58   :  { %v1736_v33 = vld [vmem:[%s2249_s6 + $0x10] sm:$0xff]   ;;  %v1738_v35 = vld [vmem:[%s2249_s6 + $0x18] sm:$0xff]   ;;  %v1740_v36 = vld [vmem:[%s2249_s6 + $0x20] sm:$0xff]  }
  0x59   :  { %1564 = vmatpush3.bf16.msra.mxu1 %v1714_v37  ;;  %v1742_v2 = vld [vmem:[%s2249_s6 + $0x28] sm:$0xff]   ;;  %v1744_v37 = vld [vmem:[%s2249_s6 + $0x30] sm:$0xff]   ;;  %v762_v40 = vld [vmem:[%s2246_s3] sm:$0x3] }
  0x5a   :  { %1565 = vmatprep.subr.bf16.mxu1 %v1797_v32  ;;  %v771_v43 = vrot.slane %v762_v40, %v770_v41 }
  0x5d   :  { %1566 = vmatpush3.bf16.msra.mxu1 %v1715_v38  ;;  %v1746_v38 = vld [vmem:[%s2249_s6 + $0x38] sm:$0xff]   ;;  %s1800_s6 = smov [#allocation2]  }
  0x5e   :  { %1567 = vmatprep.subr.bf16.mxu1 %v1797_v32  ;;  %s1299_s25 = sshll.u32 %s1800_s6, 4  ;;  %s1300_s25 = int_to_ptr.vmem [resolvable:$true] %s1299_s25 }
  0x5f   :  { %s1747_s3 = scalar_lea.vmem %s1300_s25, 64  ;;  %p1752_p1 = scmp.lt.s32.totalorder %s1300_s25, %s1300_s25 }
  0x60   :  { %p1748_p0 = scmp.ne.s32.totalorder %s1300_s25, %s1747_s3  ;;  %p1753_p2 = scmp.lt.s32.totalorder %s1747_s3, %s1747_s3 }
  0x61   :  { %1568 = vmatpush3.bf16.msra.mxu1 %v1716_v39  ;;  %v766_v39 = vsub.s32 0, %v1947_v34 }
  0x62   :  { %1593 = vmatprep.subr.bf16.mxu1 %v1797_v32  ;;  %p1754_p3 = por %p1753_p2, %p1752_p1 }
  0x63   :  { %v767_v42 = vrot.slane %v762_v40, %v766_v39 }
  0x64   :  { %p1755_p4 = pnand %p1754_p3, %p1748_p0 }
  0x95   :  { %v857_v45 = vpop.permute.xlu0 %856 }
  0x96   :  { %vm861_vm1 = vcmp.eq.s32.totalorder %v857_v45, %v852_v44 }
  0x99   :  { %v860_v46 = vpop.permute.xlu0 %859 }
  0x9a   :  { %vm862_vm2 = vcmp.eq.s32.totalorder %v860_v46, %v852_v44 }
  0x9b   :  { %vm1403_vm3 = vmpackc.low %vm862_vm2, %vm861_vm1 }
  0x9c   :  { %1570 = vmatmul.mubr.msk.bf16.vlgmr.msra.gmra.mrb[8].mxu1 %vm1403_vm3, %v1799_v47 }
  0x9d   :  { %1609 = vmatprep.mubr.msk.bf16.mxu1 %vm1798_vm0, %v1797_v32  ;;  %1594 = vmatpush3.bf16.msra.mxu1 %v1731_v58 }
  0x9e   :  { %1595 = vmatprep.subr.bf16.mxu1 %v1797_v32 }
  0xa1   :  { %1596 = vmatpush3.bf16.msra.mxu1 %v1733_v61 }
  0xa2   :  { %1597 = vmatprep.subr.bf16.mxu1 %v1797_v32 }
  0xa5   :  { %1598 = vmatpush3.bf16.msra.mxu1 %v1735_v8 }
  0xa6   :  { %1599 = vmatprep.subr.bf16.mxu1 %v1797_v32 }
  0xa9   :  { %1600 = vmatpush3.bf16.msra.mxu1 %v1737_v12 }
  0xaa   :  { %1601 = vmatprep.subr.bf16.mxu1 %v1797_v32 }
  0xad   :  { %1602 = vmatpush3.bf16.msra.mxu1 %v1739_v14 }
  0xae   :  { %1603 = vmatprep.subr.bf16.mxu1 %v1797_v32 }
  0xb1   :  { %1604 = vmatpush3.bf16.msra.mxu1 %v1741_v16 }
  0xb2   :  { %1605 = vmatprep.subr.bf16.mxu1 %v1797_v32 }
  0xb5   :  { %1606 = vmatpush3.bf16.msra.mxu1 %v1743_v18 }
  0xb6   :  { %1607 = vmatprep.subr.bf16.mxu1 %v1797_v32 }
  0xb9   :  { %1608 = vmatpush3.bf16.msra.mxu1 %v1745_v23 }
  0xf6   :  { %v1445_v48 = vpop.f32.mrb[0].mxu0 }
  0xf7   :  { %v1467_v49 = vpop.f32.mrb[0].mxu1  ;;  %v1446_v50 = vpop.f32.mrb[1].mxu0 }
  0xf8   :  { %v1468_v51 = vpop.f32.mrb[1].mxu1  ;;  %v1447_v52 = vadd.f32 %v1446_v50, %v1445_v48  ;;  %v1448_v54 = vpop.f32.mrb[2].mxu0 }
  0xf9   :  { %v1469_v53 = vadd.f32 %v1468_v51, %v1467_v49  ;;  %v1470_v55 = vpop.f32.mrb[2].mxu1  ;;  %v1449_v56 = vpop.f32.mrb[3].mxu0 }
  0xfa   :  { %v1471_v29 = vpop.f32.mrb[3].mxu1 }
  0xfb   :  { %v672_v57 = vadd.f32 %v1469_v53, %v1447_v52 }
 0x116   :  { %v1489_v59 = vpop.f32.mrb[4].mxu0 }
 0x117   :  { %v1511_v60 = vpop.f32.mrb[4].mxu1  ;;  %v1490_v62 = vpop.f32.mrb[5].mxu0 }
 0x118   :  { %v1512_v63 = vpop.f32.mrb[5].mxu1  ;;  %v1491_v0 = vadd.f32 %v1490_v62, %v1489_v59  ;;  %v1492_v3 = vpop.f32.mrb[6].mxu0 }
 0x119   :  { %v1513_v1 = vadd.f32 %v1512_v63, %v1511_v60  ;;  %v1514_v4 = vpop.f32.mrb[6].mxu1  ;;  %v1493_v5 = vpop.f32.mrb[7].mxu0 }
 0x11a   :  { %v1515_v6 = vpop.f32.mrb[7].mxu1  ;;  %v712_v7 = vadd.f32 %v1491_v0, %v672_v57 }
 0x11c   :  { %v752_v9 = vadd.f32 %v1513_v1, %v712_v7 }
 0x11e   :  { %v757_v11 = vpack.c.bf16 %v752_v9, %v752_v9 }
 0x120   :  { %1391 = vmatmul.mubr.msk.bf16.vlgmr.msra.gmra.mrb[8].mxu0 %vm794_vm4, %v757_v11 }
 0x121   :  { %1574 = vmatpush3.bf16.msra.mxu0 %v1723_v10  ;;  %1589 = vmatprep.mubr.msk.bf16.mxu0 %vm1798_vm0, %v1797_v32 }
 0x122   :  { %1575 = vmatprep.subr.bf16.mxu0 %v1797_v32 }
 0x125   :  { %1576 = vmatpush3.bf16.msra.mxu0 %v1724_v13 }
 0x126   :  { %1577 = vmatprep.subr.bf16.mxu0 %v1797_v32 }
 0x129   :  { %1578 = vmatpush3.bf16.msra.mxu0 %v1725_v15 }
 0x12a   :  { %1579 = vmatprep.subr.bf16.mxu0 %v1797_v32 }
 0x12d   :  { %1580 = vmatpush3.bf16.msra.mxu0 %v1726_v17 }
 0x12e   :  { %1581 = vmatprep.subr.bf16.mxu0 %v1797_v32 }
 0x131   :  { %1582 = vmatpush3.bf16.msra.mxu0 %v1727_v19 }
 0x132   :  { %1583 = vmatprep.subr.bf16.mxu0 %v1797_v32 }
 0x135   :  { %1584 = vmatpush3.bf16.msra.mxu0 %v1728_v20 }
 0x136   :  { %1585 = vmatprep.subr.bf16.mxu0 %v1797_v32 }
 0x139   :  { %1586 = vmatpush3.bf16.msra.mxu0 %v1729_v21 }
 0x13a   :  { %1587 = vmatprep.subr.bf16.mxu0 %v1797_v32 }
 0x13d   :  { %1588 = vmatpush3.bf16.msra.mxu0 %v1730_v22 }
 0x13e   :  { %1613 = vmatprep.subr.bf16.mxu0 %v1797_v32 }
 0x16f   :  { %v966_v24 = vpop.f32.mrb[8].mxu1 }
 0x170   :  { %v1571_v25 = vpop.f32.mrb[9].mxu1 }
 0x171   :  { %v969_v26 = vpop.f32.mrb[10].mxu1 }
 0x172   :  { %v973_v28 = vpack.c.bf16 %v969_v26, %v966_v24  ;;  %v1572_v30 = vpop.f32.mrb[11].mxu1 }
 0x174   :  { %1590 = vmatmul.mubr.bf16.vlgmr.msra.gmra.mrb[12].mxu0 %v973_v28 }
 0x175   :  { %1614 = vmatpush3.bf16.msra.mxu0 %v1732_v27  ;;  %1629 = vmatprep.mubr.msk.bf16.mxu0 %vm1798_vm0, %v1797_v32 }
 0x176   :  { %1615 = vmatprep.subr.bf16.mxu0 %v1797_v32 }
 0x179   :  { %1616 = vmatpush3.bf16.msra.mxu0 %v1734_v31 }
 0x17a   :  { %1617 = vmatprep.subr.bf16.mxu0 %v1797_v32 }
 0x17d   :  { %1618 = vmatpush3.bf16.msra.mxu0 %v1736_v33 }
 0x17e   :  { %1619 = vmatprep.subr.bf16.mxu0 %v1797_v32 }
 0x181   :  { %1620 = vmatpush3.bf16.msra.mxu0 %v1738_v35 }
 0x182   :  { %1621 = vmatprep.subr.bf16.mxu0 %v1797_v32 }
 0x185   :  { %1622 = vmatpush3.bf16.msra.mxu0 %v1740_v36 }
 0x186   :  { %1623 = vmatprep.subr.bf16.mxu0 %v1797_v32 }
 0x189   :  { %1624 = vmatpush3.bf16.msra.mxu0 %v1742_v2 }
 0x18a   :  { %1625 = vmatprep.subr.bf16.mxu0 %v1797_v32 }
 0x18d   :  { %1626 = vmatpush3.bf16.msra.mxu0 %v1744_v37 }
 0x18e   :  { %1627 = vmatprep.subr.bf16.mxu0 %v1797_v32 }
 0x191   :  { %1628 = vmatpush3.bf16.msra.mxu0 %v1746_v38 }
 0x1f3   :  { %v832_v44 = vpop.f32.mrb[8].mxu0 }
 0x1f4   :  { %v833_v45 = vadd.f32 %v832_v44, %v767_v42  ;;  %v834_v46 = vpop.f32.mrb[9].mxu0 }
 0x1f5   :  { %v835_v47 = vadd.f32 %v834_v46, %v771_v43  ;;  %v836_v48 = vpop.f32.mrb[10].mxu0 }
 0x1f6   :  { %v1081_v49 = vpack.c.bf16 %v833_v45, %v833_v45  ;;  %v837_v50 = vpop.f32.mrb[11].mxu0 }
 0x1f7   :  { %v1187_v51 = vpack.c.bf16 %v835_v47, %v835_v47  ;;  %v841_v32 = vcombine.low %v833_v45, %v835_v47 }
 0x1f8   :  { %1610 = vmatmul.mubr.bf16.vlgmr.msra.gmra.mrb[12].mxu1 %v1081_v49 }
 0x1f9   :  { %1630 = vmatmul.mubr.bf16.vlgmr.msra.gmra.mrb[16].mxu0 %v1187_v51  ;;  %1392 = vst.sshfl [vmem:[#allocation2] sm:$0x33 pattern:$0x76325410] %v841_v32 }
 0x1fa   :  { %1758 = shalt.err (!%p1755_p4)
}
 0x1fb   :  { %s1759_s4 = scalar_lea.hbm %s2250_s7, 64 }
 0x1fc   :  { %p1760_p5 = scmp.ne.s32.totalorder %s2250_s7, %s1759_s4  ;;  %p1763_p6 = scmp.lt.u32.totalorder %s1759_s4, %s2250_s7 }
 0x1fe   :  { %p1765_p7 = pnand %p1763_p6, %p1760_p5 }
 0x200   :  { %1768 = shalt.err (!%p1765_p7)
}
 0x201   :  { %1302 = dma.vmem_to_hbm [thread:$0]  %s1300_s25, 64, %s2250_s7, [#allocation3]  }
 0x202   :  { %s1801_s10 = smov [#allocation4]  }
 0x203   :  { %s1308_s1 = sshll.u32 %s1801_s10, 4  ;;  %s1309_s1 = int_to_ptr.vmem [resolvable:$true] %s1308_s1 }
 0x204   :  { %s1769_s11 = scalar_lea.vmem %s1309_s1, 384  ;;  %p1774_p9 = scmp.lt.s32.totalorder %s1309_s1, %s1309_s1 }
 0x205   :  { %p1770_p8 = scmp.ne.s32.totalorder %s1309_s1, %s1769_s11  ;;  %p1775_p10 = scmp.lt.s32.totalorder %s1769_s11, %s1769_s11 }
 0x207   :  { %p1776_p11 = por %p1775_p10, %p1774_p9 }
 0x209   :  { %p1777_p12 = pnand %p1776_p11, %p1770_p8 }
 0x247   :  { %v1072_v34 = vpop.f32.mrb[12].mxu0 }
 0x248   :  { %1079 = vst [vmem:[#allocation4] sm:$0xff] %v1072_v34  ;;  %v1591_v52 = vpop.f32.mrb[13].mxu0 }
 0x249   :  { %v1075_v53 = vpop.f32.mrb[14].mxu0 }
 0x24a   :  { %1080 = vst [vmem:[#allocation4 + $0x8] sm:$0xff] %v1075_v53  ;;  %v1592_v54 = vpop.f32.mrb[15].mxu0 }
 0x2cb   :  { %v1180_v55 = vpop.f32.mrb[12].mxu1 }
 0x2cc   :  { %1186 = vst [vmem:[#allocation4 + $0x10] sm:$0x3] %v1180_v55  ;;  %v1611_v56 = vpop.f32.mrb[13].mxu1  ;;  %v1286_v29 = vpop.f32.mrb[16].mxu0 }
 0x2cd   :  { %1292 = vst [vmem:[#allocation4 + $0x12] sm:$0x3] %v1286_v29  ;;  %v1183_v57 = vpop.f32.mrb[14].mxu1  ;;  %v1631_v58 = vpop.f32.mrb[17].mxu0 }
 0x2ce   :  { %v1612_v59 = vpop.f32.mrb[15].mxu1  ;;  %v1289_v60 = vpop.f32.mrb[18].mxu0 }
 0x2cf   :  { %1780 = shalt.err (!%p1777_p12)
}
 0x2d0   :  { %s1781_s13 = scalar_lea.hbm %s2251_s8, 384 }
 0x2d1   :  { %p1782_p13 = scmp.ne.s32.totalorder %s2251_s8, %s1781_s13  ;;  %p1785_p0 = scmp.lt.u32.totalorder %s1781_s13, %s2251_s8 }
 0x2d3   :  { %p1787_p1 = pnand %p1785_p0, %p1782_p13 }
 0x2d5   :  { %1790 = shalt.err (!%p1787_p1)
}
 0x2d6   :  { %s1802_s18 = smov 128   ;;  %s1803_s19 = smov 8   ;;  %v1632_v61 = vpop.f32.mrb[19].mxu0 }
 0x2d7   :  { %1314 = dma.vmem_to_hbm [thread:$0]  %s1309_s1, 384, %s2251_s8, [#allocation5], %s1802_s18, %s1802_s18, %s1803_s19  }
 0x2d8   :  { %1791 = dma.done.wait [#allocation3], 64  }
 0x2d9   :  { %1792 = vsyncadd [#allocation3], 4294967232 }
 0x2da   :  { %1793 = dma.done.wait [#allocation5], 384  }
 0x2db   :  { %1794 = vsyncadd [#allocation5], 4294966912 }
 0x2dc   :  { %1321 = vsyncpa [#allocation3], 1 }
 0x2dd   :  { %1322 = vsyncpa [#allocation5], 1 }

</bundles_post_ra>
